<compile_context>
chip_gen: v7x
topology: tpu7x:2x2x1
jax: 0.10.0
libtpu: 0.0.40
codegen_flags: <defaults>
</compile_context>

<pallas_src>
import functools

import jax
import jax.numpy as jnp
from jax.experimental import pallas as pl
from jax.experimental.pallas import tpu as pltpu


IN_DIM = 784
IN_PAD = 896      # 7 * 128: lane-dense padded contraction dim for fc1
H1_DIM = 320
H2_DIM = 50
OUT_DIM = 10
H2_PAD = 128      # lane-dense padding for fc2 output / fc3 input
OUT_PAD = 128     # lane-dense padding for the final output


def _round_up(n, m):
    return ((n + m - 1) // m) * m


def mlp_kernel(x_ref, w1_ref, w2_ref, w3_ref, b3_ref, o_ref):
    # fc1 + relu  (bf16 inputs, f32 accumulate; relu on the f32 accumulator)
    h1 = jnp.dot(x_ref[...], w1_ref[...], preferred_element_type=jnp.float32)
    h1 = jnp.maximum(h1, 0.0).astype(jnp.bfloat16)
    # fc2 + relu  (w2 lane-padded to 128; padded cols are zero -> relu(0)=0)
    h2 = jnp.dot(h1, w2_ref[...], preferred_element_type=jnp.float32)
    h2 = jnp.maximum(h2, 0.0).astype(jnp.bfloat16)
    # fc3 (+ bias), lane-dense 128-wide output store (unmasked vst)
    out = jnp.dot(h2, w3_ref[...], preferred_element_type=jnp.float32)
    o_ref[...] = out + b3_ref[...]


@functools.partial(jax.jit, static_argnames=("tile_b",))
def mlp_forward(x, w1, w2, w3, b3, *, tile_b=1024):
    """x: any shape that flattens to (-1, 784). Returns (batch, 10) float32."""
    x2d = jnp.asarray(x, jnp.float32).reshape(-1, IN_DIM)   # view(-1, 784)
    batch = x2d.shape[0]

    # Batch tile: multiple of 8 sublanes; pad batch up to a whole number of tiles.
    tb = min(tile_b, _round_up(batch, 8))
    padded_batch = _round_up(batch, tb)
    num_tiles = padded_batch // tb

    # --- bf16 + zero-padded operand prep.  Padding preserves exact semantics:
    #     padded K rows/cols are zero and padded outputs are sliced off below. ---
    x_pad = jnp.zeros((padded_batch, IN_PAD), jnp.bfloat16)
    x_pad = x_pad.at[:batch, :IN_DIM].set(x2d.astype(jnp.bfloat16))

    w1b = jnp.zeros((IN_PAD, H1_DIM), jnp.bfloat16)
    w1b = w1b.at[:IN_DIM, :].set(w1.astype(jnp.bfloat16))           # (896, 320)
    w2b = jnp.zeros((H1_DIM, H2_PAD), jnp.bfloat16)
    w2b = w2b.at[:, :H2_DIM].set(w2.astype(jnp.bfloat16))           # (320, 128)
    w3b = jnp.zeros((H2_PAD, OUT_PAD), jnp.bfloat16)
    w3b = w3b.at[:H2_DIM, :OUT_DIM].set(w3.astype(jnp.bfloat16))    # (128, 128)
    b3p = jnp.zeros((1, OUT_PAD), jnp.float32)
    b3p = b3p.at[0, :OUT_DIM].set(b3.astype(jnp.float32))           # (1, 128)

    flops = 2 * padded_batch * (IN_PAD * H1_DIM + H1_DIM * H2_PAD + H2_PAD * OUT_PAD)
    bytes_accessed = (
        x_pad.size * 2 + w1b.size * 2 + w2b.size * 2 + w3b.size * 2
        + b3p.size * 4 + padded_batch * OUT_PAD * 4
    )

    out = pl.pallas_call(
        mlp_kernel,
        out_shape=jax.ShapeDtypeStruct((padded_batch, OUT_PAD), jnp.float32),
        grid=(num_tiles,),
        in_specs=[
            # x: tiled over batch, double-buffered by the Pallas pipeline.
            pl.BlockSpec((tb, IN_PAD), lambda i: (i, 0)),
            # Weights / bias: constant index_map -> DMA'd once, VMEM-resident.
            pl.BlockSpec((IN_PAD, H1_DIM), lambda i: (0, 0)),
            pl.BlockSpec((H1_DIM, H2_PAD), lambda i: (0, 0)),
            pl.BlockSpec((H2_PAD, OUT_PAD), lambda i: (0, 0)),
            pl.BlockSpec((1, OUT_PAD), lambda i: (0, 0)),
        ],
        out_specs=pl.BlockSpec((tb, OUT_PAD), lambda i: (i, 0)),
        compiler_params=pltpu.CompilerParams(
            dimension_semantics=("parallel",),
        ),
        cost_estimate=pl.CostEstimate(
            flops=flops, transcendentals=0, bytes_accessed=bytes_accessed
        ),
    )(x_pad, w1b, w2b, w3b, b3p)

    # Strip batch padding and lane padding (padded cols only contain zeros + 0 bias).
    return out[:batch, :OUT_DIM]


def init_params(key):
    """Deterministic init mimicking nn.Linear default (uniform +/- 1/sqrt(fan_in)).
    Weights are produced directly in (in_features, out_features) layout."""
    k1, k2, k3, k4 = jax.random.split(key, 4)
    w1 = jax.random.uniform(k1, (IN_DIM, H1_DIM), jnp.float32,
                            minval=-1.0 / jnp.sqrt(784.0), maxval=1.0 / jnp.sqrt(784.0))
    w2 = jax.random.uniform(k2, (H1_DIM, H2_DIM), jnp.float32,
                            minval=-1.0 / jnp.sqrt(320.0), maxval=1.0 / jnp.sqrt(320.0))
    w3 = jax.random.uniform(k3, (H2_DIM, OUT_DIM), jnp.float32,
                            minval=-1.0 / jnp.sqrt(50.0), maxval=1.0 / jnp.sqrt(50.0))
    b3 = jax.random.uniform(k4, (OUT_DIM,), jnp.float32,
                            minval=-1.0 / jnp.sqrt(50.0), maxval=1.0 / jnp.sqrt(50.0))
    return w1, w2, w3, b3


if __name__ == "__main__":
    key = jax.random.PRNGKey(0)
    kx, kp = jax.random.split(key)

    # MNIST-like input: (batch, 1, 28, 28), flattened to (batch, 784) inside forward.
    x = jax.random.normal(kx, (8, 1, 28, 28), jnp.float32)
    w1, w2, w3, b3 = init_params(kp)

    out = mlp_forward(x, w1, w2, w3, b3)
    out = jax.block_until_ready(out)
    assert out.shape == (8, 10)

    # Reference check against the same bf16-input / f32-accumulate math (tight).
    x2d = x.reshape(-1, IN_DIM)
    h1 = jnp.maximum(
        jnp.dot(x2d.astype(jnp.bfloat16), w1.astype(jnp.bfloat16),
                preferred_element_type=jnp.float32), 0.0)
    h2 = jnp.maximum(
        jnp.dot(h1.astype(jnp.bfloat16), w2.astype(jnp.bfloat16),
                preferred_element_type=jnp.float32), 0.0)
    ref_bf16 = jnp.dot(h2.astype(jnp.bfloat16), w3.astype(jnp.bfloat16),
                       preferred_element_type=jnp.float32) + b3[None, :]
    assert jnp.allclose(out, ref_bf16, atol=1e-3, rtol=1e-3)

    # Sanity check against the full-f32 PyTorch-equivalent reference (loose, bf16 error).
    ref_f32 = jnp.maximum(x2d @ w1, 0.0)
    ref_f32 = jnp.maximum(ref_f32 @ w2, 0.0)
    ref_f32 = ref_f32 @ w3 + b3[None, :]
    assert jnp.allclose(out, ref_f32, atol=5e-2, rtol=5e-2)

    print("KERNEL_OK")
</pallas_src>

<mosaic_0001>
module attributes {stable_mosaic.version = 11 : i64} {
  func.func @mlp_kernel(%arg0: i32, %arg1: memref<8x896xbf16, #tpu.memory_space<vmem>>, %arg2: memref<896x320xbf16, #tpu.memory_space<vmem>>, %arg3: memref<320x128xbf16, #tpu.memory_space<vmem>>, %arg4: memref<128x128xbf16, #tpu.memory_space<vmem>>, %arg5: memref<1x128xf32, #tpu.memory_space<vmem>>, %arg6: memref<8x128xf32, #tpu.memory_space<vmem>>) attributes {dimension_semantics = [#tpu.dimension_semantics<parallel>], iteration_bounds = array<i64: 1>, scalar_prefetch = 0 : i64, scratch_operands = 0 : i64, tpu.core_type = #tpu.core_type<tc>, window_params = [{transform_indices = @transform_0, window_bounds = array<i64: 8, 896>}, {pipeline_mode = #tpu.pipeline_mode<synchronous>, transform_indices = @transform_1, window_bounds = array<i64: 896, 320>}, {pipeline_mode = #tpu.pipeline_mode<synchronous>, transform_indices = @transform_2, window_bounds = array<i64: 320, 128>}, {pipeline_mode = #tpu.pipeline_mode<synchronous>, transform_indices = @transform_3, window_bounds = array<i64: 128, 128>}, {pipeline_mode = #tpu.pipeline_mode<synchronous>, transform_indices = @transform_4, window_bounds = array<i64: 1, 128>}, {transform_indices = @transform_5, window_bounds = array<i64: 8, 128>}]} {
    %c0 = arith.constant 0 : index
    %c0_0 = arith.constant 0 : index
    %0 = vector.load %arg1[%c0, %c0_0] : memref<8x896xbf16, #tpu.memory_space<vmem>>, vector<8x896xbf16>
    %c0_1 = arith.constant 0 : index
    %c0_2 = arith.constant 0 : index
    %1 = vector.load %arg2[%c0_1, %c0_2] : memref<896x320xbf16, #tpu.memory_space<vmem>>, vector<896x320xbf16>
    %cst = arith.constant dense<0.000000e+00> : vector<8x320xf32>
    %2 = tpu.matmul %0, %1, %cst {dimension_numbers = #tpu.dot_dimension_numbers<[1], [0], [0], [1], [0, 0, 1, 1], [], []>} : vector<8x896xbf16>, vector<896x320xbf16>, vector<8x320xf32> -> vector<8x320xf32>
    %cst_3 = arith.constant 0.000000e+00 : f32
    %3 = vector.broadcast %cst_3 : f32 to vector<8x320xf32>
    %4 = arith.maximumf %2, %3 : vector<8x320xf32>
    %5 = arith.truncf %4 : vector<8x320xf32> to vector<8x320xbf16>
    %c0_4 = arith.constant 0 : index
    %c0_5 = arith.constant 0 : index
    %6 = vector.load %arg3[%c0_4, %c0_5] : memref<320x128xbf16, #tpu.memory_space<vmem>>, vector<320x128xbf16>
    %cst_6 = arith.constant dense<0.000000e+00> : vector<8x128xf32>
    %7 = tpu.matmul %5, %6, %cst_6 {dimension_numbers = #tpu.dot_dimension_numbers<[1], [0], [0], [1], [0, 0, 1, 1], [], []>} : vector<8x320xbf16>, vector<320x128xbf16>, vector<8x128xf32> -> vector<8x128xf32>
    %cst_7 = arith.constant 0.000000e+00 : f32
    %8 = vector.broadcast %cst_7 : f32 to vector<8x128xf32>
    %9 = arith.maximumf %7, %8 : vector<8x128xf32>
    %10 = arith.truncf %9 : vector<8x128xf32> to vector<8x128xbf16>
    %c0_8 = arith.constant 0 : index
    %c0_9 = arith.constant 0 : index
    %11 = vector.load %arg4[%c0_8, %c0_9] : memref<128x128xbf16, #tpu.memory_space<vmem>>, vector<128x128xbf16>
    %cst_10 = arith.constant dense<0.000000e+00> : vector<8x128xf32>
    %12 = tpu.matmul %10, %11, %cst_10 {dimension_numbers = #tpu.dot_dimension_numbers<[1], [0], [0], [1], [0, 0, 1, 1], [], []>} : vector<8x128xbf16>, vector<128x128xbf16>, vector<8x128xf32> -> vector<8x128xf32>
    %c0_11 = arith.constant 0 : index
    %c0_12 = arith.constant 0 : index
    %13 = vector.load %arg5[%c0_11, %c0_12] : memref<1x128xf32, #tpu.memory_space<vmem>>, vector<1x128xf32>
    %14 = vector.broadcast %13 : vector<1x128xf32> to vector<8x128xf32>
    %15 = arith.addf %12, %14 : vector<8x128xf32>
    %c0_13 = arith.constant 0 : index
    %c0_14 = arith.constant 0 : index
    %16 = vector.load %arg6[%c0_13, %c0_14] : memref<8x128xf32, #tpu.memory_space<vmem>>, vector<8x128xf32>
    tpu.vector_store %arg6[%c0_13, %c0_14], %15 {strides = array<i32>} : memref<8x128xf32, #tpu.memory_space<vmem>>, vector<8x128xf32>,
    return
  }
  func.func @transform_0(%arg0: i32) -> (i32, i32) {
    %c0_i32 = arith.constant 0 : i32
    %c0_i32_0 = arith.constant 0 : i32
    return %arg0, %c0_i32 : i32, i32
  }
  func.func @transform_1(%arg0: i32) -> (i32, i32) {
    %c0_i32 = arith.constant 0 : i32
    %c0_i32_0 = arith.constant 0 : i32
    %c0_i32_1 = arith.constant 0 : i32
    return %c0_i32, %c0_i32_0 : i32, i32
  }
  func.func @transform_2(%arg0: i32) -> (i32, i32) {
    %c0_i32 = arith.constant 0 : i32
    %c0_i32_0 = arith.constant 0 : i32
    %c0_i32_1 = arith.constant 0 : i32
    return %c0_i32, %c0_i32_0 : i32, i32
  }
  func.func @transform_3(%arg0: i32) -> (i32, i32) {
    %c0_i32 = arith.constant 0 : i32
    %c0_i32_0 = arith.constant 0 : i32
    %c0_i32_1 = arith.constant 0 : i32
    return %c0_i32, %c0_i32_0 : i32, i32
  }
  func.func @transform_4(%arg0: i32) -> (i32, i32) {
    %c0_i32 = arith.constant 0 : i32
    %c0_i32_0 = arith.constant 0 : i32
    %c0_i32_1 = arith.constant 0 : i32
    return %c0_i32, %c0_i32_0 : i32, i32
  }
  func.func @transform_5(%arg0: i32) -> (i32, i32) {
    %c0_i32 = arith.constant 0 : i32
    %c0_i32_0 = arith.constant 0 : i32
    return %arg0, %c0_i32 : i32, i32
  }
}

</mosaic_0001>

<bundles_post_ra>
// kernel: mlp_forward.1
= control target key start
LH: loop header
LB: loop body
LE: loop exit
PB: predicated region body
PF: predicated region fallthrough
CT: control target
= control target key end

     0   :  { %vm2541_vm0 = vmmov 0   ;;  %s3231_s0 = inlined_call_operand.vmem [shape: bf16[8,896], index: 0, kind: input, shape index: {}]   ;;  %s3232_s1 = inlined_call_operand.vmem [shape: bf16[896,320], index: 1, kind: input, shape index: {}]   ;;  %s3233_s2 = inlined_call_operand.vmem [shape: bf16[320,128], index: 2, kind: input, shape index: {}]   ;;  %s3234_s3 = inlined_call_operand.vmem [shape: bf16[128,128], index: 3, kind: input, shape index: {}]   ;;  %s3235_s4 = inlined_call_operand.vmem [shape: f32[1,128], index: 4, kind: input, shape index: {}]   ;;  %s3236_s5 = inlined_call_operand.hbm [shape: f32[8,128], index: 5, kind: output, shape index: {}]  }
   0x1   :  { %v2257_v0 = vld [vmem:[%s3232_s1 + $0x4] ss:$12 sps:$4 sm:$0xff]   ;;  %v2259_v1 = vld [vmem:[%s3232_s1] ss:$12 sps:$4 sm:$0xff]   ;;  %v2260_v2 = vld [vmem:[%s3232_s1 + $0x1c] ss:$12 sps:$4 sm:$0xff]  }
   0x2   :  { %1171 = vmatprep.subr.bf16.mxu0 %v2257_v0  ;;  %v2262_v3 = vld [vmem:[%s3232_s1 + $0x18] ss:$12 sps:$4 sm:$0xff]   ;;  %v2263_v4 = vld [vmem:[%s3232_s1 + $0x34] ss:$12 sps:$4 sm:$0xff]   ;;  %v2265_v5 = vld [vmem:[%s3232_s1 + $0x30] ss:$12 sps:$4 sm:$0xff]  }
   0x3   :  { %1172 = vmatpush1.bf16.msra.mxu0 %v2259_v1  ;;  %v2266_v6 = vld [vmem:[%s3232_s1 + $0x4c] ss:$12 sps:$4 sm:$0xff]   ;;  %v2275_v7 = vld [vmem:[%s3232_s1 + $0xc8] ss:$12 sps:$4 sm:$0xff]   ;;  %v2269_v10 = vld [vmem:[%s3232_s1 + $0x64] ss:$12 sps:$4 sm:$0xff]  }
   0x4   :  { %1173 = vmatprep.subr.bf16.mxu0 %v2260_v2  ;;  %v2276_v8 = vld [vmem:[%s3232_s1 + $0x8] ss:$12 sps:$4 sm:$0xff]   ;;  %2078 = vmatprep.subr.bf16.mxu1 %v2275_v7  ;;  %v2280_v11 = vld [vmem:[%s3232_s1 + $0xe0] ss:$12 sps:$4 sm:$0xff]   ;;  %v2285_v15 = vld [vmem:[%s3232_s1 + $0xf8] ss:$12 sps:$4 sm:$0xff]  }
   0x5   :  { %v2268_v9 = vld [vmem:[%s3232_s1 + $0x48] ss:$12 sps:$4 sm:$0xff]   ;;  %2079 = vmatpush3.bf16.msra.mxu1 %v2276_v8  ;;  %v2281_v12 = vld [vmem:[%s3232_s1 + $0x20] ss:$12 sps:$4 sm:$0xff]   ;;  %v2286_v16 = vld [vmem:[%s3232_s1 + $0x38] ss:$12 sps:$4 sm:$0xff]  }
   0x6   :  { %v2271_v13 = vld [vmem:[%s3232_s1 + $0x60] ss:$12 sps:$4 sm:$0xff]   ;;  %v2272_v14 = vld [vmem:[%s3232_s1 + $0x7c] ss:$12 sps:$4 sm:$0xff]   ;;  %2080 = vmatprep.subr.bf16.mxu1 %v2280_v11  ;;  %v2274_v17 = vld [vmem:[%s3232_s1 + $0x78] ss:$12 sps:$4 sm:$0xff]  }
   0x7   :  { %1174 = vmatpush1.bf16.msra.mxu0 %v2262_v3  ;;  %v2290_v18 = vld [vmem:[%s3232_s1 + $0x110] ss:$12 sps:$4 sm:$0xff]   ;;  %v2277_v20 = vld [vmem:[%s3232_s1 + $0x94] ss:$12 sps:$4 sm:$0xff]   ;;  %v2282_v24 = vld [vmem:[%s3232_s1 + $0xac] ss:$12 sps:$4 sm:$0xff]  }
   0x8   :  { %1175 = vmatprep.subr.bf16.mxu0 %v2263_v4  ;;  %v2291_v19 = vld [vmem:[%s3232_s1 + $0x50] ss:$12 sps:$4 sm:$0xff]   ;;  %v2295_v22 = vld [vmem:[%s3232_s1 + $0x128] ss:$12 sps:$4 sm:$0xff]   ;;  %v2300_v25 = vld [vmem:[%s3232_s1 + $0x140] ss:$12 sps:$4 sm:$0xff]  }
   0x9   :  { %2081 = vmatpush3.bf16.msra.mxu1 %v2281_v12  ;;  %v2279_v21 = vld [vmem:[%s3232_s1 + $0x90] ss:$12 sps:$4 sm:$0xff]   ;;  %v2296_v23 = vld [vmem:[%s3232_s1 + $0x68] ss:$12 sps:$4 sm:$0xff]   ;;  %v2301_v28 = vld [vmem:[%s3232_s1 + $0x80] ss:$12 sps:$4 sm:$0xff]  }
   0xa   :  { %2082 = vmatprep.subr.bf16.mxu1 %v2285_v15  ;;  %v2284_v26 = vld [vmem:[%s3232_s1 + $0xa8] ss:$12 sps:$4 sm:$0xff]   ;;  %v2287_v27 = vld [vmem:[%s3232_s1 + $0xc4] ss:$12 sps:$4 sm:$0xff]   ;;  %v2289_v30 = vld [vmem:[%s3232_s1 + $0xc0] ss:$12 sps:$4 sm:$0xff]  }
   0xb   :  { %1176 = vmatpush1.bf16.msra.mxu0 %v2265_v5  ;;  %v2305_v29 = vld [vmem:[%s3232_s1 + $0x158] ss:$12 sps:$4 sm:$0xff]   ;;  %v2292_v31 = vld [vmem:[%s3232_s1 + $0xdc] ss:$12 sps:$4 sm:$0xff]   ;;  %v2297_v35 = vld [vmem:[%s3232_s1 + $0xf4] ss:$12 sps:$4 sm:$0xff]  }
   0xc   :  { %1177 = vmatprep.subr.bf16.mxu0 %v2266_v6  ;;  %v2306_v32 = vld [vmem:[%s3232_s1 + $0x98] ss:$12 sps:$4 sm:$0xff]   ;;  %v2310_v33 = vld [vmem:[%s3232_s1 + $0x170] ss:$12 sps:$4 sm:$0xff]   ;;  %v2317_v39 = vld [vmem:[%s3232_s1 + $0x248] ss:$12 sps:$4 sm:$0xff]  }
   0xd   :  { %2083 = vmatpush3.bf16.msra.mxu1 %v2286_v16  ;;  %v2294_v34 = vld [vmem:[%s3232_s1 + $0xd8] ss:$12 sps:$4 sm:$0xff]   ;;  %v2311_v37 = vld [vmem:[%s3232_s1 + $0xb0] ss:$12 sps:$4 sm:$0xff]   ;;  %v2318_v43 = vld [vmem:[%s3232_s1 + $0x188] ss:$12 sps:$4 sm:$0xff]  }
   0xe   :  { %2084 = vmatprep.subr.bf16.mxu1 %v2290_v18  ;;  %v22_v36 = vld [vmem:[%s3231_s0] sm:$0xff]  ;;  %v2299_v40 = vld [vmem:[%s3232_s1 + $0xf0] ss:$12 sps:$4 sm:$0xff]   ;;  %v2302_v41 = vld [vmem:[%s3232_s1 + $0x10c] ss:$12 sps:$4 sm:$0xff]  }
   0xf   :  { %1178 = vmatpush1.bf16.msra.mxu0 %v2268_v9  ;;  %v1874_v38 = vcombine.high %v22_v36, %v22_v36  ;;  %v1873_v42 = vcombine.low %v22_v36, %v22_v36  ;;  %v2322_v44 = vld [vmem:[%s3232_s1 + $0x260] ss:$12 sps:$4 sm:$0xff]   ;;  %v2304_v45 = vld [vmem:[%s3232_s1 + $0x108] ss:$12 sps:$4 sm:$0xff]   ;;  %v2307_v47 = vld [vmem:[%s3232_s1 + $0x124] ss:$12 sps:$4 sm:$0xff]  }
  0x10   :  { %1179 = vmatprep.subr.bf16.mxu0 %v2269_v10  ;;  %v2323_v46 = vld [vmem:[%s3232_s1 + $0x1a0] ss:$12 sps:$4 sm:$0xff]   ;;  %v2327_v48 = vld [vmem:[%s3232_s1 + $0x278] ss:$12 sps:$4 sm:$0xff]   ;;  %v2312_v50 = vld [vmem:[%s3232_s1 + $0x13c] ss:$12 sps:$4 sm:$0xff]  }
  0x11   :  { %2085 = vmatpush3.bf16.msra.mxu1 %v2291_v19  ;;  %1367 = vmatprep.mubr.bf16.mxu1 %v1874_v38  ;;  %v2309_v49 = vld [vmem:[%s3232_s1 + $0x120] ss:$12 sps:$4 sm:$0xff]   ;;  %v2328_v51 = vld [vmem:[%s3232_s1 + $0x1b8] ss:$12 sps:$4 sm:$0xff]   ;;  %v2332_v52 = vld [vmem:[%s3232_s1 + $0x290] ss:$12 sps:$4 sm:$0xff]  }
  0x12   :  { %2086 = vmatprep.subr.bf16.mxu1 %v2295_v22  ;;  %1203 = vmatprep.mubr.bf16.mxu0 %v1874_v38  ;;  %v2314_v53 = vld [vmem:[%s3232_s1 + $0x138] ss:$12 sps:$4 sm:$0xff]   ;;  %v2319_v54 = vld [vmem:[%s3232_s1 + $0x154] ss:$12 sps:$4 sm:$0xff]   ;;  %v2333_v55 = vld [vmem:[%s3232_s1 + $0x1d0] ss:$12 sps:$4 sm:$0xff]  }
  0x13   :  { %1180 = vmatpush1.bf16.msra.mxu0 %v2271_v13  ;;  %v2337_v56 = vld [vmem:[%s3232_s1 + $0x2a8] ss:$12 sps:$4 sm:$0xff]   ;;  %v2321_v57 = vld [vmem:[%s3232_s1 + $0x150] ss:$12 sps:$4 sm:$0xff]   ;;  %v2324_v58 = vld [vmem:[%s3232_s1 + $0x16c] ss:$12 sps:$4 sm:$0xff]  }
  0x14   :  { %1181 = vmatprep.subr.bf16.mxu0 %v2272_v14  ;;  %v2338_v59 = vld [vmem:[%s3232_s1 + $0x1e8] ss:$12 sps:$4 sm:$0xff]   ;;  %v2342_v60 = vld [vmem:[%s3232_s1 + $0x2c0] ss:$12 sps:$4 sm:$0xff]   ;;  %v2331_v62 = vld [vmem:[%s3232_s1 + $0x184] ss:$12 sps:$4 sm:$0xff]  }
  0x15   :  { %2087 = vmatpush3.bf16.msra.mxu1 %v2296_v23  ;;  %v2326_v61 = vld [vmem:[%s3232_s1 + $0x168] ss:$12 sps:$4 sm:$0xff]   ;;  %v2343_v63 = vld [vmem:[%s3232_s1 + $0x200] ss:$12 sps:$4 sm:$0xff]   ;;  %v2347_v0 = vld [vmem:[%s3232_s1 + $0x2d8] ss:$12 sps:$4 sm:$0xff]  }
  0x16   :  { %2088 = vmatprep.subr.bf16.mxu1 %v2300_v25  ;;  %v2329_v1 = vld [vmem:[%s3232_s1 + $0x180] ss:$12 sps:$4 sm:$0xff]   ;;  %v2336_v3 = vld [vmem:[%s3232_s1 + $0x19c] ss:$12 sps:$4 sm:$0xff]   ;;  %v2348_v5 = vld [vmem:[%s3232_s1 + $0x218] ss:$12 sps:$4 sm:$0xff]  }
  0x17   :  { %1182 = vmatpush1.bf16.msra.mxu0 %v2274_v17  ;;  %v23_v2 = vld [vmem:[%s3231_s0 + $0x8] sm:$0xff]  ;;  %v2352_v6 = vld [vmem:[%s3232_s1 + $0x2f0] ss:$12 sps:$4 sm:$0xff]   ;;  %v2334_v7 = vld [vmem:[%s3232_s1 + $0x198] ss:$12 sps:$4 sm:$0xff]  }
  0x18   :  { %1183 = vmatprep.subr.bf16.mxu0 %v2277_v20  ;;  %v1876_v4 = vcombine.high %v23_v2, %v23_v2  ;;  %v2353_v8 = vld [vmem:[%s3232_s1 + $0x230] ss:$12 sps:$4 sm:$0xff]   ;;  %v2341_v9 = vld [vmem:[%s3232_s1 + $0x1b4] ss:$12 sps:$4 sm:$0xff]   ;;  %v2793_v12 = vcombine.low %v23_v2, %v23_v2  ;;  %v2346_v13 = vld [vmem:[%s3232_s1 + $0x1cc] ss:$12 sps:$4 sm:$0xff]  }
  0x19   :  { %2089 = vmatpush3.bf16.msra.mxu1 %v2301_v28  ;;  %v2359_v10 = vld [vmem:[%s3232_s1 + $0x3c8] ss:$12 sps:$4 sm:$0xff]   ;;  %v2339_v11 = vld [vmem:[%s3232_s1 + $0x1b0] ss:$12 sps:$4 sm:$0xff]   ;;  %v2364_v15 = vld [vmem:[%s3232_s1 + $0x3e0] ss:$12 sps:$4 sm:$0xff]  }
  0x1a   :  { %2090 = vmatprep.subr.bf16.mxu1 %v2305_v29  ;;  %v2360_v14 = vld [vmem:[%s3232_s1 + $0x308] ss:$12 sps:$4 sm:$0xff]   ;;  %v2351_v17 = vld [vmem:[%s3232_s1 + $0x1e4] ss:$12 sps:$4 sm:$0xff]   ;;  %v2365_v18 = vld [vmem:[%s3232_s1 + $0x320] ss:$12 sps:$4 sm:$0xff]  }
  0x1b   :  { %1184 = vmatpush1.bf16.msra.mxu0 %v2279_v21  ;;  %v2344_v16 = vld [vmem:[%s3232_s1 + $0x1c8] ss:$12 sps:$4 sm:$0xff]   ;;  %v2369_v19 = vld [vmem:[%s3232_s1 + $0x3f8] ss:$12 sps:$4 sm:$0xff]   ;;  %v2349_v20 = vld [vmem:[%s3232_s1 + $0x1e0] ss:$12 sps:$4 sm:$0xff]  }
  0x1c   :  { %1185 = vmatprep.subr.bf16.mxu0 %v2282_v24  ;;  %v2356_v21 = vld [vmem:[%s3232_s1 + $0x1fc] ss:$12 sps:$4 sm:$0xff]   ;;  %v2370_v22 = vld [vmem:[%s3232_s1 + $0x338] ss:$12 sps:$4 sm:$0xff]   ;;  %v2363_v25 = vld [vmem:[%s3232_s1 + $0x214] ss:$12 sps:$4 sm:$0xff]  }
  0x1d   :  { %2091 = vmatpush3.bf16.msra.mxu1 %v2306_v32  ;;  %v2374_v23 = vld [vmem:[%s3232_s1 + $0x410] ss:$12 sps:$4 sm:$0xff]   ;;  %v2354_v24 = vld [vmem:[%s3232_s1 + $0x1f8] ss:$12 sps:$4 sm:$0xff]   ;;  %v2380_v29 = vld [vmem:[%s3232_s1 + $0x368] ss:$12 sps:$4 sm:$0xff]  }
  0x1e   :  { %2092 = vmatprep.subr.bf16.mxu1 %v2310_v33  ;;  %v2361_v28 = vld [vmem:[%s3232_s1 + $0x210] ss:$12 sps:$4 sm:$0xff]   ;;  %v2366_v33 = vld [vmem:[%s3232_s1 + $0x228] ss:$12 sps:$4 sm:$0xff]   ;;  %v2385_v36 = vld [vmem:[%s3232_s1 + $0x380] ss:$12 sps:$4 sm:$0xff]  }
  0x1f   :  { %1186 = vmatpush1.bf16.msra.mxu0 %v2284_v26  ;;  %v2375_v26 = vld [vmem:[%s3232_s1 + $0x350] ss:$12 sps:$4 sm:$0xff]   ;;  %v2371_v38 = vld [vmem:[%s3232_s1 + $0x240] ss:$12 sps:$4 sm:$0xff]   ;;  %v2425_v2 = vld [vmem:[%s3232_s1 + $0x518] ss:$12 sps:$4 sm:$0xff]  }
  0x20   :  { %1187 = vmatprep.subr.bf16.mxu0 %v2287_v27  ;;  %v2379_v27 = vld [vmem:[%s3232_s1 + $0x428] ss:$12 sps:$4 sm:$0xff]  }
  0x21   :  { %2093 = vmatpush3.bf16.msra.mxu1 %v2311_v37  ;;  %v24_v32 = vld [vmem:[%s3231_s0 + $0x10] sm:$0xff]  ;;  %v2389_v37 = vld [vmem:[%s3232_s1 + $0x458] ss:$12 sps:$4 sm:$0xff]  }
  0x22   :  { %2100 = vmatprep.subr.bf16.mxu1 %v2317_v39  ;;  %v2378_v39 = vld [vmem:[%s3232_s1 + $0x25c] ss:$12 sps:$4 sm:$0xff]  }
  0x23   :  { %1188 = vmatpush1.bf16.msra.mxu0 %v2289_v30  ;;  %v2368_v30 = vld [vmem:[%s3232_s1 + $0x22c] ss:$12 sps:$4 sm:$0xff]  }
  0x24   :  { %1189 = vmatprep.subr.bf16.mxu0 %v2292_v31  ;;  %1368 = vmatmul.mubr.bf16.vlgmr.msra.gmra.mrb[0].mxu1 %v1873_v42  ;;  %v2384_v31 = vld [vmem:[%s3232_s1 + $0x440] ss:$12 sps:$4 sm:$0xff]  }
  0x25   :  { %2101 = vmatpush3.bf16.msra.mxu1 %v2318_v43  ;;  %1407 = vmatprep.mubr.bf16.mxu1 %v1876_v4  ;;  %v2395_v43 = vld [vmem:[%s3232_s1 + $0x3b0] ss:$12 sps:$4 sm:$0xff]  }
  0x26   :  { %2102 = vmatprep.subr.bf16.mxu1 %v2322_v44  ;;  %v2383_v44 = vld [vmem:[%s3232_s1 + $0x274] ss:$12 sps:$4 sm:$0xff]  }
  0x27   :  { %1190 = vmatpush1.bf16.msra.mxu0 %v2294_v34  ;;  %v2859_v34 = vcombine.high %v24_v32, %v24_v32 }
  0x28   :  { %1191 = vmatprep.subr.bf16.mxu0 %v2297_v35  ;;  %v2373_v35 = vld [vmem:[%s3232_s1 + $0x244] ss:$12 sps:$4 sm:$0xff]  }
  0x29   :  { %2103 = vmatpush3.bf16.msra.mxu1 %v2323_v46  ;;  %v2895_v46 = vcombine.low %v24_v32, %v24_v32 }
  0x2a   :  { %2104 = vmatprep.subr.bf16.mxu1 %v2327_v48  ;;  %v2388_v48 = vld [vmem:[%s3232_s1 + $0x28c] ss:$12 sps:$4 sm:$0xff]  }
  0x2b   :  { %1192 = vmatpush1.bf16.msra.mxu0 %v2299_v40  ;;  %v2390_v40 = vld [vmem:[%s3232_s1 + $0x398] ss:$12 sps:$4 sm:$0xff]  }
  0x2c   :  { %1193 = vmatprep.subr.bf16.mxu0 %v2302_v41  ;;  %v2394_v41 = vld [vmem:[%s3232_s1 + $0x470] ss:$12 sps:$4 sm:$0xff]  }
  0x2d   :  { %2105 = vmatpush3.bf16.msra.mxu1 %v2328_v51  ;;  %v2405_v51 = vld [vmem:[%s3232_s1 + $0x4a0] ss:$12 sps:$4 sm:$0xff]  }
  0x2e   :  { %2106 = vmatprep.subr.bf16.mxu1 %v2332_v52  ;;  %v2393_v52 = vld [vmem:[%s3232_s1 + $0x2a4] ss:$12 sps:$4 sm:$0xff]  }
  0x2f   :  { %1194 = vmatpush1.bf16.msra.mxu0 %v2304_v45  ;;  %v2381_v45 = vld [vmem:[%s3232_s1 + $0x270] ss:$12 sps:$4 sm:$0xff]  }
  0x30   :  { %1195 = vmatprep.subr.bf16.mxu0 %v2307_v47  ;;  %v2401_v47 = vld [vmem:[%s3232_s1 + $0x488] ss:$12 sps:$4 sm:$0xff]  }
  0x31   :  { %2107 = vmatpush3.bf16.msra.mxu1 %v2333_v55  ;;  %v2398_v55 = vld [vmem:[%s3232_s1 + $0x2bc] ss:$12 sps:$4 sm:$0xff]  }
  0x32   :  { %2108 = vmatprep.subr.bf16.mxu1 %v2337_v56  ;;  %v2396_v56 = vld [vmem:[%s3232_s1 + $0x2b8] ss:$12 sps:$4 sm:$0xff]  }
  0x33   :  { %1196 = vmatpush1.bf16.msra.mxu0 %v2309_v49  ;;  %v2540_v49 = vmov 0.0  }
  0x34   :  { %1197 = vmatprep.subr.bf16.mxu0 %v2312_v50  ;;  %v2386_v50 = vld [vmem:[%s3232_s1 + $0x288] ss:$12 sps:$4 sm:$0xff]  }
  0x35   :  { %2109 = vmatpush3.bf16.msra.mxu1 %v2338_v59  ;;  %v2402_v59 = vld [vmem:[%s3232_s1 + $0x2d0] ss:$12 sps:$4 sm:$0xff]  }
  0x36   :  { %2110 = vmatprep.subr.bf16.mxu1 %v2342_v60  ;;  %v2417_v60 = vld [vmem:[%s3232_s1 + $0x4e8] ss:$12 sps:$4 sm:$0xff]  }
  0x37   :  { %1198 = vmatpush1.bf16.msra.mxu0 %v2314_v53  ;;  %v2391_v53 = vld [vmem:[%s3232_s1 + $0x2a0] ss:$12 sps:$4 sm:$0xff]  }
  0x38   :  { %1199 = vmatprep.subr.bf16.mxu0 %v2319_v54  ;;  %v2409_v54 = vld [vmem:[%s3232_s1 + $0x4b8] ss:$12 sps:$4 sm:$0xff]  }
  0x39   :  { %2111 = vmatpush3.bf16.msra.mxu1 %v2343_v63  ;;  %v2421_v63 = vld [vmem:[%s3232_s1 + $0x500] ss:$12 sps:$4 sm:$0xff]  }
  0x3a   :  { %2112 = vmatprep.subr.bf16.mxu1 %v2347_v0  ;;  %v2412_v0 = vld [vmem:[%s3232_s1 + $0x304] ss:$12 sps:$4 sm:$0xff]  }
  0x3b   :  { %1200 = vmatpush1.bf16.msra.mxu0 %v2321_v57  ;;  %v2413_v57 = vld [vmem:[%s3232_s1 + $0x4d0] ss:$12 sps:$4 sm:$0xff]  }
  0x3c   :  { %1201 = vmatprep.subr.bf16.mxu0 %v2324_v58  ;;  %v2404_v58 = vld [vmem:[%s3232_s1 + $0x2d4] ss:$12 sps:$4 sm:$0xff]  }
  0x3d   :  { %2113 = vmatpush3.bf16.msra.mxu1 %v2348_v5  ;;  %v2420_v5 = vld [vmem:[%s3232_s1 + $0x334] ss:$12 sps:$4 sm:$0xff]  }
  0x3e   :  { %2114 = vmatprep.subr.bf16.mxu1 %v2352_v6  ;;  %v2429_v6 = vld [vmem:[%s3232_s1 + $0x530] ss:$12 sps:$4 sm:$0xff]  }
  0x3f   :  { %1202 = vmatpush1.bf16.msra.mxu0 %v2326_v61  ;;  %v2408_v61 = vld [vmem:[%s3232_s1 + $0x2ec] ss:$12 sps:$4 sm:$0xff]  }
  0x40   :  { %1212 = vmatprep.subr.bf16.mxu0 %v2331_v62  ;;  %v2406_v62 = vld [vmem:[%s3232_s1 + $0x2e8] ss:$12 sps:$4 sm:$0xff]  }
  0x41   :  { %2115 = vmatpush3.bf16.msra.mxu1 %v2353_v8  ;;  %v2418_v8 = vld [vmem:[%s3232_s1 + $0x330] ss:$12 sps:$4 sm:$0xff]  }
  0x42   :  { %1204 = vmatmul.mubr.bf16.vlgmr.msra.gmra.mrb[0].mxu0 %v1873_v42  ;;  %2122 = vmatprep.subr.bf16.mxu1 %v2359_v10  ;;  %v2376_v42 = vld [vmem:[%s3232_s1 + $0x258] ss:$12 sps:$4 sm:$0xff]   ;;  %v2422_v10 = vld [vmem:[%s3232_s1 + $0x348] ss:$12 sps:$4 sm:$0xff]  }
  0x43   :  { %1213 = vmatpush1.bf16.msra.mxu0 %v2329_v1  ;;  %1244 = vmatprep.mubr.bf16.mxu0 %v1876_v4  ;;  %v2410_v1 = vld [vmem:[%s3232_s1 + $0x300] ss:$12 sps:$4 sm:$0xff]   ;;  %v2414_v4 = vld [vmem:[%s3232_s1 + $0x318] ss:$12 sps:$4 sm:$0xff]  }
  0x44   :  { %1214 = vmatprep.subr.bf16.mxu0 %v2336_v3  ;;  %1408 = vmatmul.mubr.bf16.vlgmr.msra.gmra.mrb[4].mxu1 %v2793_v12  ;;  %v2416_v3 = vld [vmem:[%s3232_s1 + $0x31c] ss:$12 sps:$4 sm:$0xff]  }
  0x45   :  { %2123 = vmatpush3.bf16.msra.mxu1 %v2360_v14  ;;  %1447 = vmatprep.mubr.bf16.mxu1 %v2859_v34  ;;  %v2430_v14 = vld [vmem:[%s3232_s1 + $0x378] ss:$12 sps:$4 sm:$0xff]  }
  0x46   :  { %2124 = vmatprep.subr.bf16.mxu1 %v2364_v15  ;;  %v2436_v15 = vld [vmem:[%s3232_s1 + $0x394] ss:$12 sps:$4 sm:$0xff]  }
  0x47   :  { %1215 = vmatpush1.bf16.msra.mxu0 %v2334_v7  ;;  %v2981_v7 = vld [vmem:[%s3231_s0 + $0x18] ss:$0 sps:$4 sm:$0xff]  }
  0x48   :  { %1216 = vmatprep.subr.bf16.mxu0 %v2341_v9  ;;  %v2424_v9 = vld [vmem:[%s3232_s1 + $0x34c] ss:$12 sps:$4 sm:$0xff]  }
  0x49   :  { %2125 = vmatpush3.bf16.msra.mxu1 %v2365_v18 }
  0x4a   :  { %2126 = vmatprep.subr.bf16.mxu1 %v2369_v19 }
  0x4b   :  { %1217 = vmatpush1.bf16.msra.mxu0 %v2339_v11  ;;  %v2428_v11 = vld [vmem:[%s3232_s1 + $0x364] ss:$12 sps:$4 sm:$0xff]  }
  0x4c   :  { %1218 = vmatprep.subr.bf16.mxu0 %v2346_v13  ;;  %v2432_v13 = vld [vmem:[%s3232_s1 + $0x37c] ss:$12 sps:$4 sm:$0xff]  }
  0x4d   :  { %2127 = vmatpush3.bf16.msra.mxu1 %v2370_v22 }
  0x4e   :  { %2128 = vmatprep.subr.bf16.mxu1 %v2374_v23 }
  0x4f   :  { %1219 = vmatpush1.bf16.msra.mxu0 %v2344_v16  ;;  %v2434_v16 = vld [vmem:[%s3232_s1 + $0x390] ss:$12 sps:$4 sm:$0xff]  }
  0x50   :  { %1220 = vmatprep.subr.bf16.mxu0 %v2351_v17 }
  0x51   :  { %2129 = vmatpush3.bf16.msra.mxu1 %v2375_v26 }
  0x52   :  { %2130 = vmatprep.subr.bf16.mxu1 %v2379_v27 }
  0x53   :  { %1221 = vmatpush1.bf16.msra.mxu0 %v2349_v20 }
  0x54   :  { %1222 = vmatprep.subr.bf16.mxu0 %v2356_v21 }
  0x55   :  { %2131 = vmatpush3.bf16.msra.mxu1 %v2380_v29 }
  0x56   :  { %2132 = vmatprep.subr.bf16.mxu1 %v2384_v31 }
  0x57   :  { %1223 = vmatpush1.bf16.msra.mxu0 %v2354_v24 }
  0x58   :  { %1224 = vmatprep.subr.bf16.mxu0 %v2363_v25 }
  0x59   :  { %2133 = vmatpush3.bf16.msra.mxu1 %v2385_v36 }
  0x5a   :  { %2134 = vmatprep.subr.bf16.mxu1 %v2389_v37 }
  0x5b   :  { %1225 = vmatpush1.bf16.msra.mxu0 %v2361_v28 }
  0x5c   :  { %1226 = vmatprep.subr.bf16.mxu0 %v2368_v30 }
  0x5d   :  { %2135 = vmatpush3.bf16.msra.mxu1 %v2390_v40 }
  0x5e   :  { %2136 = vmatprep.subr.bf16.mxu1 %v2394_v41 }
  0x5f   :  { %1227 = vmatpush1.bf16.msra.mxu0 %v2366_v33 }
  0x60   :  { %1228 = vmatprep.subr.bf16.mxu0 %v2373_v35 }
  0x61   :  { %2137 = vmatpush3.bf16.msra.mxu1 %v2395_v43 }
  0x62   :  { %2189 = vmatprep.subr.bf16.mxu1 %v2540_v49 }
  0x63   :  { %1229 = vmatpush1.bf16.msra.mxu0 %v2371_v38 }
  0x64   :  { %1230 = vmatprep.subr.bf16.mxu0 %v2378_v39  ;;  %1448 = vmatmul.mubr.bf16.vlgmr.msra.gmra.mrb[8].mxu1 %v2895_v46 }
  0x65   :  { %2190 = vmatpush3.bf16.msra.mxu1 %v2401_v47  ;;  %2205 = vmatprep.mubr.msk.bf16.mxu1 %vm2541_vm0, %v2540_v49 }
  0x66   :  { %2191 = vmatprep.subr.bf16.mxu1 %v2540_v49 }
  0x67   :  { %1231 = vmatpush1.bf16.msra.mxu0 %v2376_v42 }
  0x68   :  { %1232 = vmatprep.subr.bf16.mxu0 %v2383_v44 }
  0x69   :  { %2192 = vmatpush3.bf16.msra.mxu1 %v2405_v51 }
  0x6a   :  { %2193 = vmatprep.subr.bf16.mxu1 %v2540_v49 }
  0x6b   :  { %1233 = vmatpush1.bf16.msra.mxu0 %v2381_v45 }
  0x6c   :  { %1234 = vmatprep.subr.bf16.mxu0 %v2388_v48 }
  0x6d   :  { %2194 = vmatpush3.bf16.msra.mxu1 %v2409_v54 }
  0x6e   :  { %2195 = vmatprep.subr.bf16.mxu1 %v2540_v49 }
  0x6f   :  { %1235 = vmatpush1.bf16.msra.mxu0 %v2386_v50 }
  0x70   :  { %1236 = vmatprep.subr.bf16.mxu0 %v2393_v52 }
  0x71   :  { %2196 = vmatpush3.bf16.msra.mxu1 %v2413_v57 }
  0x72   :  { %2197 = vmatprep.subr.bf16.mxu1 %v2540_v49 }
  0x73   :  { %1237 = vmatpush1.bf16.msra.mxu0 %v2391_v53 }
  0x74   :  { %1238 = vmatprep.subr.bf16.mxu0 %v2398_v55 }
  0x75   :  { %2198 = vmatpush3.bf16.msra.mxu1 %v2417_v60 }
  0x76   :  { %2199 = vmatprep.subr.bf16.mxu1 %v2540_v49 }
  0x77   :  { %1239 = vmatpush1.bf16.msra.mxu0 %v2396_v56 }
  0x78   :  { %1240 = vmatprep.subr.bf16.mxu0 %v2404_v58 }
  0x79   :  { %2200 = vmatpush3.bf16.msra.mxu1 %v2421_v63 }
  0x7a   :  { %2201 = vmatprep.subr.bf16.mxu1 %v2540_v49 }
  0x7b   :  { %1241 = vmatpush1.bf16.msra.mxu0 %v2402_v59 }
  0x7c   :  { %1242 = vmatprep.subr.bf16.mxu0 %v2408_v61 }
  0x7d   :  { %2202 = vmatpush3.bf16.msra.mxu1 %v2425_v2 }
  0x7e   :  { %2203 = vmatprep.subr.bf16.mxu1 %v2540_v49 }
  0x7f   :  { %1243 = vmatpush1.bf16.msra.mxu0 %v2406_v62 }
  0x80   :  { %1253 = vmatprep.subr.bf16.mxu0 %v2412_v0 }
  0x81   :  { %2204 = vmatpush3.bf16.msra.mxu1 %v2429_v6 }
  0x82   :  { %1245 = vmatmul.mubr.bf16.vlgmr.msra.gmra.mrb[0].mxu0 %v2793_v12  ;;  %v2426_v12 = vld [vmem:[%s3232_s1 + $0x360] ss:$12 sps:$4 sm:$0xff]  }
  0x83   :  { %1254 = vmatpush1.bf16.msra.mxu0 %v2410_v1  ;;  %1285 = vmatprep.mubr.bf16.mxu0 %v2859_v34 }
  0x84   :  { %1255 = vmatprep.subr.bf16.mxu0 %v2416_v3  ;;  %2206 = vmatmul.mubr.bf16.vlgmr.msra.gmra.mrb[12].mxu1 %v2981_v7 }
  0x87   :  { %1256 = vmatpush1.bf16.msra.mxu0 %v2414_v4 }
  0x88   :  { %1257 = vmatprep.subr.bf16.mxu0 %v2420_v5 }
  0x8b   :  { %1258 = vmatpush1.bf16.msra.mxu0 %v2418_v8 }
  0x8c   :  { %1259 = vmatprep.subr.bf16.mxu0 %v2424_v9 }
  0x8f   :  { %1260 = vmatpush1.bf16.msra.mxu0 %v2422_v10 }
  0x90   :  { %1261 = vmatprep.subr.bf16.mxu0 %v2428_v11 }
  0x93   :  { %1262 = vmatpush1.bf16.msra.mxu0 %v2426_v12 }
  0x94   :  { %1263 = vmatprep.subr.bf16.mxu0 %v2432_v13 }
  0x97   :  { %1264 = vmatpush1.bf16.msra.mxu0 %v2430_v14 }
  0x98   :  { %10 = vsyncpa [#allocation3], 0  ;;  %1265 = vmatprep.subr.bf16.mxu0 %v2436_v15  ;;  %v2439_v17 = vld [vmem:[%s3232_s1 + $0x3ac] ss:$12 sps:$4 sm:$0xff]   ;;  %v2437_v18 = vld [vmem:[%s3232_s1 + $0x3a8] ss:$12 sps:$4 sm:$0xff]  }
  0x99   :  { %v2442_v19 = vld [vmem:[%s3232_s1 + $0x3c4] ss:$12 sps:$4 sm:$0xff]   ;;  %v2440_v20 = vld [vmem:[%s3232_s1 + $0x3c0] ss:$12 sps:$4 sm:$0xff]   ;;  %v2445_v21 = vld [vmem:[%s3232_s1 + $0x3dc] ss:$12 sps:$4 sm:$0xff]  }
  0x9a   :  { %v2443_v22 = vld [vmem:[%s3232_s1 + $0x3d8] ss:$12 sps:$4 sm:$0xff]   ;;  %v2448_v23 = vld [vmem:[%s3232_s1 + $0x3f4] ss:$12 sps:$4 sm:$0xff]   ;;  %v2446_v24 = vld [vmem:[%s3232_s1 + $0x3f0] ss:$12 sps:$4 sm:$0xff]  }
  0x9b   :  { %1266 = vmatpush1.bf16.msra.mxu0 %v2434_v16  ;;  %v2451_v25 = vld [vmem:[%s3232_s1 + $0x40c] ss:$12 sps:$4 sm:$0xff]   ;;  %v2449_v26 = vld [vmem:[%s3232_s1 + $0x408] ss:$12 sps:$4 sm:$0xff]   ;;  %v2454_v27 = vld [vmem:[%s3232_s1 + $0x424] ss:$12 sps:$4 sm:$0xff]  }
  0x9c   :  { %1267 = vmatprep.subr.bf16.mxu0 %v2439_v17  ;;  %v2452_v28 = vld [vmem:[%s3232_s1 + $0x420] ss:$12 sps:$4 sm:$0xff]   ;;  %v2457_v29 = vld [vmem:[%s3232_s1 + $0x43c] ss:$12 sps:$4 sm:$0xff]   ;;  %v2455_v30 = vld [vmem:[%s3232_s1 + $0x438] ss:$12 sps:$4 sm:$0xff]  }
  0x9d   :  { %v2460_v31 = vld [vmem:[%s3232_s1 + $0x454] ss:$12 sps:$4 sm:$0xff]   ;;  %v2458_v32 = vld [vmem:[%s3232_s1 + $0x450] ss:$12 sps:$4 sm:$0xff]   ;;  %v2463_v33 = vld [vmem:[%s3232_s1 + $0x46c] ss:$12 sps:$4 sm:$0xff]  }
  0x9e   :  { %v2461_v34 = vld [vmem:[%s3232_s1 + $0x468] ss:$12 sps:$4 sm:$0xff]   ;;  %v2466_v35 = vld [vmem:[%s3232_s1 + $0x484] ss:$12 sps:$4 sm:$0xff]   ;;  %v2464_v36 = vld [vmem:[%s3232_s1 + $0x480] ss:$12 sps:$4 sm:$0xff]  }
  0x9f   :  { %1268 = vmatpush1.bf16.msra.mxu0 %v2437_v18  ;;  %v2469_v37 = vld [vmem:[%s3232_s1 + $0x49c] ss:$12 sps:$4 sm:$0xff]   ;;  %v2467_v38 = vld [vmem:[%s3232_s1 + $0x498] ss:$12 sps:$4 sm:$0xff]   ;;  %v2542_v39 = vmov 0   ;;  %v2492_v57 = vld [vmem:[%s3233_s2 + $0x50] sm:$0xff]  }
  0xa0   :  { %1269 = vmatprep.subr.bf16.mxu0 %v2442_v19  ;;  %v2472_v40 = vld [vmem:[%s3232_s1 + $0x4b4] ss:$12 sps:$4 sm:$0xff]   ;;  %v2470_v41 = vld [vmem:[%s3232_s1 + $0x4b0] ss:$12 sps:$4 sm:$0xff]   ;;  %v2475_v42 = vld [vmem:[%s3232_s1 + $0x4cc] ss:$12 sps:$4 sm:$0xff]  }
  0xa1   :  { %v2473_v43 = vld [vmem:[%s3232_s1 + $0x4c8] ss:$12 sps:$4 sm:$0xff]   ;;  %v2478_v44 = vld [vmem:[%s3232_s1 + $0x4e4] ss:$12 sps:$4 sm:$0xff]   ;;  %v2476_v45 = vld [vmem:[%s3232_s1 + $0x4e0] ss:$12 sps:$4 sm:$0xff]  }
  0xa2   :  { %v2479_v47 = vld [vmem:[%s3232_s1 + $0x4f8] ss:$12 sps:$4 sm:$0xff]   ;;  %v2484_v48 = vld [vmem:[%s3232_s1 + $0x514] ss:$12 sps:$4 sm:$0xff]   ;;  %v2482_v50 = vld [vmem:[%s3232_s1 + $0x510] ss:$12 sps:$4 sm:$0xff]  }
  0xa3   :  { %1270 = vmatpush1.bf16.msra.mxu0 %v2440_v20  ;;  %v2487_v51 = vld [vmem:[%s3232_s1 + $0x52c] ss:$12 sps:$4 sm:$0xff]   ;;  %v2485_v52 = vld [vmem:[%s3232_s1 + $0x528] ss:$12 sps:$4 sm:$0xff]   ;;  %v2488_v53 = vld [vmem:[%s3233_s2 + $0x40] sm:$0xff]   ;;  %vm1661_vm1 = vcmask 523264  }
  0xa4   :  { %1271 = vmatprep.subr.bf16.mxu0 %v2445_v21  ;;  %v2489_v54 = vld [vmem:[%s3233_s2] sm:$0xff]   ;;  %v2490_v55 = vld [vmem:[%s3233_s2 + $0x48] sm:$0xff]   ;;  %2153 = vmatprep.subr.bf16.mxu1 %v2488_v53  ;;  %v2493_v58 = vld [vmem:[%s3233_s2 + $0x10] sm:$0xff]   ;;  %s2543_s11 = smov [#allocation2]  }
  0xa5   :  { %2154 = vmatpush3.bf16.msra.mxu1 %v2489_v54  ;;  %v2491_v56 = vld [vmem:[%s3233_s2 + $0x8] sm:$0xff]   ;;  %v2494_v59 = vld [vmem:[%s3233_s2 + $0x58] sm:$0xff]   ;;  %v2496_v61 = vld [vmem:[%s3233_s2 + $0x60] sm:$0xff]  }
  0xa6   :  { %2155 = vmatprep.subr.bf16.mxu1 %v2490_v55  ;;  %v2495_v60 = vld [vmem:[%s3233_s2 + $0x18] sm:$0xff]   ;;  %v2497_v62 = vld [vmem:[%s3233_s2 + $0x20] sm:$0xff]   ;;  %v2498_v63 = vld [vmem:[%s3233_s2 + $0x68] sm:$0xff]  }
  0xa7   :  { %1272 = vmatpush1.bf16.msra.mxu0 %v2443_v22  ;;  %v2499_v0 = vld [vmem:[%s3233_s2 + $0x28] sm:$0xff]   ;;  %v2500_v1 = vld [vmem:[%s3233_s2 + $0x70] sm:$0xff]   ;;  %v2502_v14 = vld [vmem:[%s3233_s2 + $0x78] sm:$0xff]  }
  0xa8   :  { %1273 = vmatprep.subr.bf16.mxu0 %v2448_v23  ;;  %v2501_v2 = vld [vmem:[%s3233_s2 + $0x30] sm:$0xff]   ;;  %v2503_v15 = vld [vmem:[%s3233_s2 + $0x38] sm:$0xff]  }
  0xa9   :  { %2156 = vmatpush3.bf16.msra.mxu1 %v2491_v56 }
  0xaa   :  { %2157 = vmatprep.subr.bf16.mxu1 %v2492_v57 }
  0xab   :  { %1274 = vmatpush1.bf16.msra.mxu0 %v2446_v24 }
  0xac   :  { %1275 = vmatprep.subr.bf16.mxu0 %v2451_v25 }
  0xad   :  { %2158 = vmatpush3.bf16.msra.mxu1 %v2493_v58 }
  0xae   :  { %2159 = vmatprep.subr.bf16.mxu1 %v2494_v59 }
  0xaf   :  { %1276 = vmatpush1.bf16.msra.mxu0 %v2449_v26 }
  0xb0   :  { %1277 = vmatprep.subr.bf16.mxu0 %v2454_v27 }
  0xb1   :  { %2160 = vmatpush3.bf16.msra.mxu1 %v2495_v60 }
  0xb2   :  { %2161 = vmatprep.subr.bf16.mxu1 %v2496_v61 }
  0xb3   :  { %1278 = vmatpush1.bf16.msra.mxu0 %v2452_v28 }
  0xb4   :  { %1279 = vmatprep.subr.bf16.mxu0 %v2457_v29 }
  0xb5   :  { %2162 = vmatpush3.bf16.msra.mxu1 %v2497_v62 }
  0xb6   :  { %2163 = vmatprep.subr.bf16.mxu1 %v2498_v63 }
  0xb7   :  { %1280 = vmatpush1.bf16.msra.mxu0 %v2455_v30 }
  0xb8   :  { %1281 = vmatprep.subr.bf16.mxu0 %v2460_v31 }
  0xb9   :  { %2164 = vmatpush3.bf16.msra.mxu1 %v2499_v0 }
  0xba   :  { %2165 = vmatprep.subr.bf16.mxu1 %v2500_v1 }
  0xbb   :  { %1282 = vmatpush1.bf16.msra.mxu0 %v2458_v32 }
  0xbc   :  { %1283 = vmatprep.subr.bf16.mxu0 %v2463_v33 }
  0xbd   :  { %2166 = vmatpush3.bf16.msra.mxu1 %v2501_v2 }
  0xbe   :  { %2167 = vmatprep.subr.bf16.mxu1 %v2502_v14 }
  0xbf   :  { %1284 = vmatpush1.bf16.msra.mxu0 %v2461_v34  ;;  %v2504_v34 = vld [vmem:[%s3233_s2 + $0x80] sm:$0xff]  }
  0xc0   :  { %1294 = vmatprep.subr.bf16.mxu0 %v2466_v35 }
  0xc1   :  { %2168 = vmatpush3.bf16.msra.mxu1 %v2503_v15 }
  0xc2   :  { %1286 = vmatmul.mubr.bf16.vlgmr.msra.gmra.mrb[0].mxu0 %v2895_v46  ;;  %v2481_v46 = vld [vmem:[%s3232_s1 + $0x4fc] ss:$12 sps:$4 sm:$0xff]   ;;  %2209 = vmatprep.subr.bf16.mxu1 %v2540_v49 }
  0xc3   :  { %1295 = vmatpush1.bf16.msra.mxu0 %v2464_v36  ;;  %1326 = vmatprep.mubr.bf16.mxu0 %v2542_v39  ;;  %v2505_v36 = vld [vmem:[%s3233_s2 + $0x88] sm:$0xff]  }
  0xc4   :  { %1296 = vmatprep.subr.bf16.mxu0 %v2469_v37  ;;  %v2506_v37 = vld [vmem:[%s3233_s2 + $0x90] sm:$0xff]  }
  0xc7   :  { %1297 = vmatpush1.bf16.msra.mxu0 %v2467_v38  ;;  %v2507_v38 = vld [vmem:[%s3233_s2 + $0x98] sm:$0xff]  }
  0xc8   :  { %1298 = vmatprep.subr.bf16.mxu0 %v2472_v40  ;;  %v2508_v40 = vld [vmem:[%s3234_s3] sm:$0xff]  }
  0xcb   :  { %1299 = vmatpush1.bf16.msra.mxu0 %v2470_v41 }
  0xcc   :  { %1300 = vmatprep.subr.bf16.mxu0 %v2475_v42  ;;  %v2509_v42 = vld [vmem:[%s3234_s3 + $0x8] sm:$0xff]  }
  0xcf   :  { %1301 = vmatpush1.bf16.msra.mxu0 %v2473_v43  ;;  %v2510_v43 = vld [vmem:[%s3234_s3 + $0x10] sm:$0xff]  }
  0xd0   :  { %1302 = vmatprep.subr.bf16.mxu0 %v2478_v44  ;;  %v2511_v44 = vld [vmem:[%s3234_s3 + $0x18] sm:$0xff]  }
  0xd3   :  { %1303 = vmatpush1.bf16.msra.mxu0 %v2476_v45  ;;  %v2512_v45 = vld [vmem:[%s3234_s3 + $0x20] sm:$0xff]  }
  0xd4   :  { %1304 = vmatprep.subr.bf16.mxu0 %v2481_v46  ;;  %v2513_v46 = vld [vmem:[%s3234_s3 + $0x28] sm:$0xff]  }
  0xd7   :  { %1305 = vmatpush1.bf16.msra.mxu0 %v2479_v47  ;;  %v2514_v47 = vld [vmem:[%s3234_s3 + $0x30] sm:$0xff]  }
  0xd8   :  { %1306 = vmatprep.subr.bf16.mxu0 %v2484_v48  ;;  %v2515_v48 = vld [vmem:[%s3234_s3 + $0x38] sm:$0xff]   ;;  %s1865_s3 = sshll.u32 %s2543_s11, 4  ;;  %s1866_s3 = int_to_ptr.vmem [resolvable:$true] %s1865_s3 }
  0xd9   :  { %s2516_s12 = scalar_lea.vmem %s1866_s3, 128  ;;  %p2521_p1 = scmp.lt.s32.totalorder %s1866_s3, %s1866_s3 }
  0xda   :  { %p2517_p0 = scmp.ne.s32.totalorder %s1866_s3, %s2516_s12  ;;  %p2522_p2 = scmp.lt.s32.totalorder %s2516_s12, %s2516_s12 }
  0xdb   :  { %1307 = vmatpush1.bf16.msra.mxu0 %v2482_v50 }
  0xdc   :  { %1308 = vmatprep.subr.bf16.mxu0 %v2487_v51  ;;  %p2523_p3 = por %p2522_p2, %p2521_p1 }
  0xde   :  { %p2524_p4 = pnand %p2523_p3, %p2517_p0 }
  0xdf   :  { %1309 = vmatpush1.bf16.msra.mxu0 %v2485_v52 }
  0xe2   :  { %1327 = vmatmul.mubr.bf16.vlgmr.msra.gmra.mrb[0].mxu0 %v2981_v7 }
  0xf7   :  { %v2094_v3 = vpop.f32.mrb[0].mxu1 }
  0xf8   :  { %v2095_v4 = vpop.f32.mrb[1].mxu1 }
  0xf9   :  { %v2096_v5 = vadd.f32 %v2095_v4, %v2094_v3  ;;  %v2097_v6 = vpop.f32.mrb[2].mxu1 }
  0xfa   :  { %v2098_v7 = vpop.f32.mrb[3].mxu1 }
 0x117   :  { %v2116_v8 = vpop.f32.mrb[4].mxu1 }
 0x118   :  { %v2117_v9 = vpop.f32.mrb[5].mxu1 }
 0x119   :  { %v2118_v10 = vadd.f32 %v2117_v9, %v2116_v8  ;;  %v2119_v11 = vpop.f32.mrb[6].mxu1 }
 0x11a   :  { %v2120_v12 = vpop.f32.mrb[7].mxu1 }
 0x11b   :  { %v1410_v13 = vadd.f32 %v2118_v10, %v2096_v5 }
 0x137   :  { %v2138_v16 = vpop.f32.mrb[8].mxu1 }
 0x138   :  { %v2139_v17 = vpop.f32.mrb[9].mxu1 }
 0x139   :  { %v2140_v18 = vadd.f32 %v2139_v17, %v2138_v16  ;;  %v2141_v19 = vpop.f32.mrb[10].mxu1 }
 0x13a   :  { %v2142_v20 = vpop.f32.mrb[11].mxu1 }
 0x13b   :  { %v1450_v21 = vadd.f32 %v2140_v18, %v1410_v13 }
 0x157   :  { %v1489_v22 = vpop.f32.mrb[12].mxu1 }
 0x158   :  { %v1490_v23 = vadd.f32 %v1489_v22, %v1450_v21  ;;  %v2207_v24 = vpop.f32.mrb[13].mxu1 }
 0x159   :  { %v1492_v25 = vpop.f32.mrb[14].mxu1 }
 0x15a   :  { %v2208_v26 = vpop.f32.mrb[15].mxu1  ;;  %v1497_v39 = vmax.f32 %v1490_v23, 0.0 }
 0x15c   :  { %v1500_v41 = vpack.c.bf16 %v1497_v39, %v1497_v39 }
 0x1b5   :  { %v1328_v27 = vpop.f32.mrb[0].mxu0 }
 0x1b6   :  { %v1495_v28 = vmax.f32 %v1328_v27, 0.0  ;;  %v1330_v29 = vpop.f32.mrb[1].mxu0 }
 0x1b7   :  { %v1496_v30 = vmax.f32 %v1330_v29, 0.0  ;;  %v1332_v31 = vpop.f32.mrb[2].mxu0 }
 0x1b8   :  { %v1333_v32 = vpop.f32.mrb[3].mxu0  ;;  %v1498_v35 = vpack.c.bf16 %v1495_v28, %v1495_v28 }
 0x1b9   :  { %v1499_v33 = vpack.c.bf16 %v1496_v30, %v1496_v30 }
 0x1bb   :  { %1697 = vmatprep.mubr.bf16.mxu1 %v1499_v33 }
 0x1bc   :  { %1698 = vmatmul.mubr.bf16.vlgmr.msra.gmra.mrb[16].mxu1 %v1498_v35 }
 0x1bd   :  { %2210 = vmatpush3.bf16.msra.mxu1 %v2504_v34  ;;  %2217 = vmatprep.mubr.msk.bf16.mxu1 %vm2541_vm0, %v2540_v49 }
 0x1be   :  { %2211 = vmatprep.subr.bf16.mxu1 %v2540_v49 }
 0x1c1   :  { %2212 = vmatpush3.bf16.msra.mxu1 %v2505_v36 }
 0x1c2   :  { %2213 = vmatprep.subr.bf16.mxu1 %v2540_v49 }
 0x1c5   :  { %2214 = vmatpush3.bf16.msra.mxu1 %v2506_v37 }
 0x1c6   :  { %2215 = vmatprep.subr.bf16.mxu1 %v2540_v49 }
 0x1c9   :  { %2216 = vmatpush3.bf16.msra.mxu1 %v2507_v38 }
 0x1ca   :  { %2221 = vmatprep.subr.bf16.mxu1 %v2540_v49 }
 0x1cc   :  { %2218 = vmatmul.mubr.msk.bf16.vlgmr.msra.gmra.mrb[20].mxu1 %vm1661_vm1, %v1500_v41 }
 0x1cd   :  { %2222 = vmatpush3.bf16.msra.mxu1 %v2508_v40  ;;  %2237 = vmatprep.mubr.msk.bf16.mxu1 %vm2541_vm0, %v2540_v49 }
 0x1ce   :  { %2223 = vmatprep.subr.bf16.mxu1 %v2540_v49 }
 0x1d1   :  { %2224 = vmatpush3.bf16.msra.mxu1 %v2509_v42 }
 0x1d2   :  { %2225 = vmatprep.subr.bf16.mxu1 %v2540_v49 }
 0x1d5   :  { %2226 = vmatpush3.bf16.msra.mxu1 %v2510_v43 }
 0x1d6   :  { %2227 = vmatprep.subr.bf16.mxu1 %v2540_v49 }
 0x1d9   :  { %2228 = vmatpush3.bf16.msra.mxu1 %v2511_v44 }
 0x1da   :  { %2229 = vmatprep.subr.bf16.mxu1 %v2540_v49 }
 0x1dd   :  { %2230 = vmatpush3.bf16.msra.mxu1 %v2512_v45 }
 0x1de   :  { %2231 = vmatprep.subr.bf16.mxu1 %v2540_v49 }
 0x1e1   :  { %2232 = vmatpush3.bf16.msra.mxu1 %v2513_v46 }
 0x1e2   :  { %2233 = vmatprep.subr.bf16.mxu1 %v2540_v49 }
 0x1e5   :  { %2234 = vmatpush3.bf16.msra.mxu1 %v2514_v47 }
 0x1e6   :  { %2235 = vmatprep.subr.bf16.mxu1 %v2540_v49  ;;  %v2069_v49 = vld [vmem:[%s3235_s4] ss:$0 sm:$0xff] }
 0x1e9   :  { %2236 = vmatpush3.bf16.msra.mxu1 %v2515_v48 }
 0x28f   :  { %v2169_v50 = vpop.f32.mrb[16].mxu1 }
 0x290   :  { %v2170_v51 = vpop.f32.mrb[17].mxu1 }
 0x291   :  { %v2171_v52 = vadd.f32 %v2170_v51, %v2169_v50  ;;  %v2172_v53 = vpop.f32.mrb[18].mxu1 }
 0x292   :  { %v2173_v54 = vpop.f32.mrb[19].mxu1 }
 0x29f   :  { %v1739_v55 = vpop.f32.mrb[20].mxu1 }
 0x2a0   :  { %v1740_v56 = vadd.f32 %v2171_v52, %v1739_v55  ;;  %v2219_v57 = vpop.f32.mrb[21].mxu1 }
 0x2a1   :  { %v1742_v58 = vpop.f32.mrb[22].mxu1 }
 0x2a2   :  { %v1745_v59 = vmax.f32 %v1740_v56, 0.0  ;;  %v2220_v60 = vpop.f32.mrb[23].mxu1 }
 0x2a4   :  { %v1746_v61 = vpack.c.bf16 %v1745_v59, %v1745_v59 }
 0x2a6   :  { %2238 = vmatmul.mubr.bf16.vlgmr.msra.gmra.mrb[24].mxu1 %v1746_v61 }
 0x379   :  { %v1852_v62 = vpop.f32.mrb[24].mxu1 }
 0x37a   :  { %v1853_v63 = vadd.f32 %v2069_v49, %v1852_v62  ;;  %v2239_v0 = vpop.f32.mrb[25].mxu1 }
 0x37b   :  { %v1855_v1 = vpop.f32.mrb[26].mxu1 }
 0x37c   :  { %1858 = vst [vmem:[#allocation2] sm:$0xff] %v1853_v63  ;;  %v2240_v2 = vpop.f32.mrb[27].mxu1 }
 0x37d   :  { %2527 = shalt.err (!%p2524_p4)
}
 0x37e   :  { %s2528_s4 = scalar_lea.hbm %s3236_s5, 128 }
 0x37f   :  { %p2529_p5 = scmp.ne.s32.totalorder %s3236_s5, %s2528_s4  ;;  %p2532_p6 = scmp.lt.u32.totalorder %s2528_s4, %s3236_s5 }
 0x381   :  { %p2534_p7 = pnand %p2532_p6, %p2529_p5 }
 0x383   :  { %2537 = shalt.err (!%p2534_p7)
}
 0x384   :  { %1868 = dma.vmem_to_hbm [thread:$0]  %s1866_s3, 128, %s3236_s5, [#allocation3]  }
 0x385   :  { %2538 = dma.done.wait [#allocation3], 128  }
 0x386   :  { %2539 = vsyncadd [#allocation3], 4294967168 }
 0x387   :  { %1872 = vsyncpa [#allocation3], 1 }

</bundles_post_ra>
